<compile_context>
chip_gen: v5e
topology: v5e:2x2
jax: 0.10.0
libtpu: 0.0.40
codegen_flags: <defaults>
</compile_context>

<pallas_src>
import functools
import math
from typing import NamedTuple

import jax
import jax.numpy as jnp
from jax.experimental import pallas as pl
from jax.experimental.pallas import tpu as pltpu


_BN_EPS = 1e-5
_NEG_INF = -1e9
_TILE_R_CAP = 2048          # max output rows per tile (multiple of 8); review: 1024-4096


def _round_up(x, m):
    return (x + m - 1) // m * m


# ----------------------------------------------------------------------------
# Static layer plan (mirrors ECCVGenerator.__init__ / forward order)
# ----------------------------------------------------------------------------
class LayerCfg(NamedTuple):
    name: str
    kind: str          # "conv" | "convT"
    cin: int
    cout: int
    k: int
    stride: int
    pad: int
    dil: int
    relu: bool
    bn: bool
    softmax: bool = False


_PLAN = (
    LayerCfg("m1c1", "conv", 1, 64, 3, 1, 1, 1, True, False),
    LayerCfg("m1c2", "conv", 64, 64, 3, 2, 1, 1, True, True),
    LayerCfg("m2c1", "conv", 64, 128, 3, 1, 1, 1, True, False),
    LayerCfg("m2c2", "conv", 128, 128, 3, 2, 1, 1, True, True),
    LayerCfg("m3c1", "conv", 128, 256, 3, 1, 1, 1, True, False),
    LayerCfg("m3c2", "conv", 256, 256, 3, 1, 1, 1, True, False),
    LayerCfg("m3c3", "conv", 256, 256, 3, 2, 1, 1, True, True),
    LayerCfg("m4c1", "conv", 256, 512, 3, 1, 1, 1, True, False),
    LayerCfg("m4c2", "conv", 512, 512, 3, 1, 1, 1, True, False),
    LayerCfg("m4c3", "conv", 512, 512, 3, 1, 1, 1, True, True),
    LayerCfg("m5c1", "conv", 512, 512, 3, 1, 2, 2, True, False),
    LayerCfg("m5c2", "conv", 512, 512, 3, 1, 2, 2, True, False),
    LayerCfg("m5c3", "conv", 512, 512, 3, 1, 2, 2, True, True),
    LayerCfg("m6c1", "conv", 512, 512, 3, 1, 2, 2, True, False),
    LayerCfg("m6c2", "conv", 512, 512, 3, 1, 2, 2, True, False),
    LayerCfg("m6c3", "conv", 512, 512, 3, 1, 2, 2, True, True),
    LayerCfg("m7c1", "conv", 512, 512, 3, 1, 1, 1, True, False),
    LayerCfg("m7c2", "conv", 512, 512, 3, 1, 1, 1, True, False),
    LayerCfg("m7c3", "conv", 512, 512, 3, 1, 1, 1, True, True),
    LayerCfg("m8c1", "convT", 512, 256, 4, 2, 1, 1, True, False),
    LayerCfg("m8c2", "conv", 256, 256, 3, 1, 1, 1, True, False),
    LayerCfg("m8c3", "conv", 256, 256, 3, 1, 1, 1, True, False),
    LayerCfg("m8c4", "conv", 256, 313, 1, 1, 0, 1, False, False, True),
)


# ----------------------------------------------------------------------------
# Pallas kernel: row-tiled fused conv-as-tap-matmul + bias/ReLU/BN(/softmax)
# ----------------------------------------------------------------------------
def _conv_mm_kernel(x_ref, w_ref, bt_ref, o_ref, acc_ref, *,
                    offsets, tile_r, relu, shift, softmax):
    """One (TILE_R, tn) output tile: accumulate the static tap matmuls from the
    resident flattened activation into an f32 VMEM scratch, then apply the
    minimal epilogue (bias, optional ReLU / BN shift / channel softmax)."""
    base = pl.multiple_of(pl.program_id(1) * tile_r, 8)
    for t, off in enumerate(offsets):                       # static unroll, <= 9 taps
        xt = x_ref[pl.ds(base + off, tile_r), :]
        p = jnp.dot(xt, w_ref[t], preferred_element_type=jnp.float32)
        if t == 0:
            acc_ref[...] = p
        else:
            acc_ref[...] += p
    r = acc_ref[...] + bt_ref[0:1, :]                        # bias (BN scale pre-folded)
    if relu:
        r = jnp.maximum(r, 0.0)
    if shift:
        r = r + bt_ref[1:2, :]                               # folded BN shift (post-ReLU)
    if softmax:
        m = jnp.max(r, axis=-1, keepdims=True)
        e = jnp.exp(r - m)                                   # padded lanes: bias -1e9 -> 0
        r = e / jnp.sum(e, axis=-1, keepdims=True)           # exact divide (probabilities)
    o_ref[...] = r.astype(o_ref.dtype)


def _conv_matmul(xin, w, bt, *, rows_out, offsets, relu, shift, softmax, out_dtype):
    cin = xin.shape[1]
    taps, cin_w, np_ = w.shape
    assert cin_w == cin and taps == len(offsets)

    # Channel tiling: 256-wide tiles (>=2 steps for 512/1024-channel layers so
    # both v7x TCs get work); the fused-softmax layer needs the full channel
    # axis in one tile.
    tn = np_ if (softmax or np_ % 256 != 0) else 256
    n_ct = np_ // tn

    # Balanced row tiling (capped, multiple of 8).
    n_rt = max(1, int(pl.cdiv(rows_out, _TILE_R_CAP)))
    tile_r = _round_up(int(pl.cdiv(rows_out, n_rt)), 8)
    n_rt = int(pl.cdiv(rows_out, tile_r))
    rows_pad = n_rt * tile_r

    # The last row tile's taps may read past rows_pad: zero-pad the input rows.
    need = _round_up(rows_pad + max(offsets), 8)
    if xin.shape[0] < need:
        xin = jnp.pad(xin, ((0, need - xin.shape[0]), (0, 0)))
    r_in = xin.shape[0]

    kernel = functools.partial(_conv_mm_kernel, offsets=offsets, tile_r=tile_r,
                               relu=relu, shift=shift, softmax=softmax)

    # Explicit VMEM budget: resident activation (x2 buffers) + weight/bias/out
    # double buffers + f32 accumulator + epilogue-temporary slack.
    est = (2 * r_in * cin * xin.dtype.itemsize
           + 2 * taps * cin * tn * w.dtype.itemsize
           + 2 * 2 * tn * 4
           + 2 * tile_r * tn * jnp.dtype(out_dtype).itemsize
           + 3 * tile_r * tn * 4
           + (8 << 20))
    vmem_limit = int(max(est, 32 * 1024 * 1024))   # <= 32 MiB at these sizes (v7x-safe)

    return pl.pallas_call(
        kernel,
        out_shape=jax.ShapeDtypeStruct((rows_pad, np_), out_dtype),
        grid_spec=pltpu.PrefetchScalarGridSpec(
            num_scalar_prefetch=0,
            grid=(n_ct, n_rt),                 # row axis innermost: weight tile stays put
            in_specs=[
                pl.BlockSpec((r_in, cin), lambda j, i: (0, 0)),          # resident activation
                pl.BlockSpec((taps, cin, tn), lambda j, i: (0, 0, j)),   # weight tile
                pl.BlockSpec((2, tn), lambda j, i: (0, j)),              # packed bias / BN shift
            ],
            out_specs=pl.BlockSpec((tile_r, tn), lambda j, i: (i, j)),
            scratch_shapes=[pltpu.VMEM((tile_r, tn), jnp.float32)],
        ),
        compiler_params=pltpu.CompilerParams(
            dimension_semantics=("parallel", "parallel"),
            vmem_limit_bytes=vmem_limit),
    )(xin, w, bt)


# ----------------------------------------------------------------------------
# Layer wrappers (plain-JAX glue around the Pallas kernel)
# ----------------------------------------------------------------------------
def _conv_layer(x, p, cfg):
    """x: (N, H, W, C) bf16 with C >= cfg.cin (extra channels are zero-padded
    carry-over from the previous layer).  Returns padded-channel output."""
    N, H, W, C = x.shape
    k, s, pad, d = cfg.k, cfg.stride, cfg.pad, cfg.dil
    x = x.astype(jnp.bfloat16)
    w, bt = p["w"], p["bt"]
    out_dtype = jnp.float32 if cfg.softmax else jnp.bfloat16
    shift = cfg.bn

    if C < 8:
        # Tiny-Cin stem conv: materialized im2col (K = k*k*C <= 9, padded to 16)
        # at output resolution; avoids degenerate K=1 MXU matmuls.
        Hs = (H + 2 * pad - d * (k - 1) - 1) // s + 1
        Ws = (W + 2 * pad - d * (k - 1) - 1) // s + 1
        xpad = jnp.pad(x, ((0, 0), (pad, pad), (pad, pad), (0, 0)))
        cols = []
        for kh in range(k):
            for kw in range(k):
                cols.append(xpad[:, kh * d: kh * d + s * (Hs - 1) + 1: s,
                                 kw * d: kw * d + s * (Ws - 1) + 1: s, :])
        xin = jnp.concatenate(cols, axis=-1).reshape(N * Hs * Ws, k * k * C)
        xin = jnp.pad(xin, ((0, 0), (0, w.shape[1] - k * k * C)))
        rows_out = N * Hs * Ws
        out = _conv_matmul(xin, w, bt, rows_out=rows_out, offsets=(0,),
                           relu=cfg.relu, shift=shift, softmax=cfg.softmax,
                           out_dtype=out_dtype)
        return out[:rows_out].reshape(N, Hs, Ws, -1)

    if s == 2:
        # 4-phase space-to-depth: stride-2 3x3 conv -> 4-tap conv on the phase grid.
        Hp2 = _round_up(H + 2 * pad, 2)
        Wp2 = _round_up(W + 2 * pad, 2)
        xpad = jnp.pad(x, ((0, 0), (pad, Hp2 - H - pad), (pad, Wp2 - W - pad), (0, 0)))
        H2, W2 = Hp2 // 2, Wp2 // 2
        # (N,H2,2,W2,2,C) -> (N,H2,W2,2,2,C) -> (N,H2,W2,4C): phase-major channel groups
        x4 = xpad.reshape(N, H2, 2, W2, 2, C).transpose(0, 1, 3, 2, 4, 5)
        x4 = x4.reshape(N, H2, W2, 4 * C)
        xin = x4.reshape(N * H2 * W2, 4 * C)
        offsets = (0, 1, W2, W2 + 1)
        Hs = (H + 2 * pad - d * (k - 1) - 1) // s + 1
        Ws = (W + 2 * pad - d * (k - 1) - 1) // s + 1
        rows_out = N * H2 * W2
        out = _conv_matmul(xin, w, bt, rows_out=rows_out, offsets=offsets,
                           relu=cfg.relu, shift=shift, softmax=cfg.softmax,
                           out_dtype=out_dtype)
        return out[:rows_out].reshape(N, H2, W2, -1)[:, :Hs, :Ws, :]

    # Stride-1 dense tap conv over the padded grid (taps = constant row offsets).
    Hp, Wp = H + 2 * pad, W + 2 * pad
    xpad = jnp.pad(x, ((0, 0), (pad, pad), (pad, pad), (0, 0)))
    xin = xpad.reshape(N * Hp * Wp, C)
    offsets = tuple(kh * d * Wp + kw * d for kh in range(k) for kw in range(k))
    Ho, Wo = Hp - d * (k - 1), Wp - d * (k - 1)
    rows_out = N * Hp * Wp
    out = _conv_matmul(xin, w, bt, rows_out=rows_out, offsets=offsets,
                       relu=cfg.relu, shift=shift, softmax=cfg.softmax,
                       out_dtype=out_dtype)
    return out[:rows_out].reshape(N, Hp, Wp, -1)[:, :Ho, :Wo, :]


def _conv_transpose_layer(x, p, cfg):
    """ConvTranspose2d(k=4, s=2, p=1) via the 4-phase decomposition: one dense
    2x2 conv producing 4*Cout channel groups, then a single reshape/transpose
    parity interleave (no scatter updates)."""
    N, H, W, _ = x.shape
    cout = cfg.cout
    dense_cfg = cfg._replace(kind="conv", k=2, stride=1, pad=1, dil=1, cout=4 * cout)
    dense = _conv_layer(x, p, dense_cfg)                     # (N, H+1, W+1, >=4*cout)
    dense = dense[..., :4 * cout]
    # Group axis was prepared in (1-po, 1-pw) order so a plain interleave works.
    t = dense.reshape(N, H + 1, W + 1, 2, 2, cout)
    t = t.transpose(0, 1, 3, 2, 4, 5).reshape(N, 2 * (H + 1), 2 * (W + 1), cout)
    return t[:, 1:2 * H + 1, 1:2 * W + 1, :]


def _apply_layer(x, p, cfg):
    if cfg.kind == "convT":
        return _conv_transpose_layer(x, p, cfg)
    return _conv_layer(x, p, cfg)


# ----------------------------------------------------------------------------
# Parameters: deterministic synthetic init (torch layout) + one-time preparation
# ----------------------------------------------------------------------------
def make_params(key):
    raw = {}
    keys = jax.random.split(key, len(_PLAN))
    for kk, cfg in zip(keys, _PLAN):
        kw_, kb_ = jax.random.split(kk)
        if cfg.kind == "convT":
            shape = (cfg.cin, cfg.cout, cfg.k, cfg.k)     # torch ConvTranspose2d layout
        else:
            shape = (cfg.cout, cfg.cin, cfg.k, cfg.k)     # torch Conv2d layout
        std = (2.0 / (cfg.cin * cfg.k * cfg.k)) ** 0.5
        w = jax.random.normal(kw_, shape, jnp.float32) * std
        b = jax.random.normal(kb_, (cfg.cout,), jnp.float32) * 0.01
        raw[cfg.name] = (w, b)
    return raw


def _prepare_layer(cfg, w, b, cin_eff=None):
    """Pre-transpose / pre-pad / pre-cast one layer's weights to the kernel's
    (taps, Cin_eff, Np) bf16 layout (Cin_eff = carried, channel-padded width);
    fold eval-mode BatchNorm scale into weights/bias and pack bias + BN shift."""
    cin, k = cfg.cin, cfg.k
    cin_eff = cin if cin_eff is None else cin_eff

    if cfg.kind == "convT":
        cout = cfg.cout
        wk = jnp.zeros((4, cin_eff, 4 * cout), jnp.float32)
        for po in (0, 1):
            for pw in (0, 1):
                gs = 2 * (1 - po) + (1 - pw)     # group order chosen for the interleave
                for a in (0, 1):
                    for bb in (0, 1):
                        wk = wk.at[2 * a + bb, :cin, gs * cout:(gs + 1) * cout].set(
                            w[:, :, 3 - po - 2 * a, 3 - pw - 2 * bb])
        bk = jnp.tile(b, 4)
        cout_eff = 4 * cout
    elif cin < 8:
        kk = k * k * cin
        kp = _round_up(kk, 16)
        wk = jnp.transpose(w, (2, 3, 1, 0)).reshape(kk, cfg.cout)
        wk = jnp.pad(wk, ((0, kp - kk), (0, 0)))[None]          # (1, Kp, Cout)
        bk = b
        cout_eff = cfg.cout
    elif cfg.stride == 2:
        # 4-phase stride-2 decomposition: tap t=(a//2,b//2), phase group g=(a%2,b%2).
        cout = cfg.cout
        wt = jnp.transpose(w, (2, 3, 1, 0))                      # (kh, kw, cin, cout)
        wk4 = jnp.zeros((4, 4, cin_eff, cout), jnp.float32)      # (tap, group, cin_eff, cout)
        for a in range(k):
            for bb in range(k):
                t = 2 * (a // 2) + (bb // 2)
                g = 2 * (a % 2) + (bb % 2)
                wk4 = wk4.at[t, g, :cin, :].set(wt[a, bb])
        wk = wk4.reshape(4, 4 * cin_eff, cout)
        bk = b
        cout_eff = cout
    else:
        wt = jnp.transpose(w, (2, 3, 1, 0)).reshape(k * k, cin, cfg.cout)
        wk = jnp.pad(wt, ((0, 0), (0, cin_eff - cin), (0, 0)))
        bk = b
        cout_eff = cfg.cout

    # Fold eval-mode BN (default stats): BN(relu(z)) == relu(z*s) + t  (s > 0).
    if cfg.bn:
        s = 1.0 / math.sqrt(1.0 + _BN_EPS)
        wk = wk * s
        bk = bk * s
    np_ = _round_up(cout_eff, 128)
    padn = np_ - cout_eff
    w_mat = jnp.pad(wk, ((0, 0), (0, 0), (0, padn))).astype(jnp.bfloat16)
    # Softmax layer: padded lanes get a -1e9 bias so they vanish in the softmax.
    bias_pad = _NEG_INF if cfg.softmax else 0.0
    bias = jnp.pad(bk.astype(jnp.float32), (0, padn), constant_values=bias_pad)
    shift = jnp.zeros((np_,), jnp.float32)                      # BN shift (0 for default stats)
    bt = jnp.stack([bias, shift], axis=0)                       # packed (2, Np)
    return {"w": w_mat, "bt": bt}


def prepare_params(raw):
    prepared = {}
    carry = 1          # channel width of the activation carried into each layer
    for cfg in _PLAN:
        w, b = raw[cfg.name]
        prepared[cfg.name] = _prepare_layer(cfg, w, b, cin_eff=carry)
        carry = cfg.cout if cfg.kind == "convT" else _round_up(cfg.cout, 128)
    return prepared


# ----------------------------------------------------------------------------
# Forward pass (mirrors ECCVGenerator.forward: returns proba_64)
# ----------------------------------------------------------------------------
@jax.jit
def eccv_forward(prepared, input_l_nchw):
    x = (input_l_nchw - 50.0) / 100.0                          # normalize_l
    x = jnp.transpose(x, (0, 2, 3, 1)).astype(jnp.bfloat16)    # NCHW -> NHWC, bf16
    for cfg in _PLAN:
        x = _apply_layer(x, prepared[cfg.name], cfg)
    x = x[..., :_PLAN[-1].cout]                                # drop softmax channel padding
    return jnp.transpose(x, (0, 3, 1, 2)).astype(jnp.float32)  # NHWC -> NCHW


# ----------------------------------------------------------------------------
# Self-checks of the fused conv kernel against lax references (bf16 inputs)
# ----------------------------------------------------------------------------
def _ref_conv(x, w, b, stride, padding, dilation):
    y = jax.lax.conv_general_dilated(
        x, jnp.transpose(w, (2, 3, 1, 0)),
        window_strides=(stride, stride),
        padding=[(padding, padding)] * 2,
        rhs_dilation=(dilation, dilation),
        dimension_numbers=("NHWC", "HWIO", "NHWC"),
        precision=jax.lax.Precision.HIGHEST)
    return y + b


def _ref_conv_transpose(x, w, b):
    wf = jnp.transpose(w[:, :, ::-1, ::-1], (2, 3, 0, 1))
    y = jax.lax.conv_general_dilated(
        x, wf, window_strides=(1, 1), padding=[(2, 2)] * 2,
        lhs_dilation=(2, 2), dimension_numbers=("NHWC", "HWIO", "NHWC"),
        precision=jax.lax.Precision.HIGHEST)
    return y + b


_CHECKS = (
    LayerCfg("chk_stem", "conv", 1, 6, 3, 1, 1, 1, False, False),
    LayerCfg("chk_stride", "conv", 16, 24, 3, 2, 1, 1, False, False),
    LayerCfg("chk_dilate", "conv", 16, 24, 3, 1, 2, 2, False, False),
    LayerCfg("chk_convT", "convT", 16, 8, 4, 2, 1, 1, False, False),
)


def _check_layer(cfg, key, spatial=6):
    kx, kw_, kb_ = jax.random.split(key, 3)
    if cfg.kind == "convT":
        wshape = (cfg.cin, cfg.cout, cfg.k, cfg.k)
    else:
        wshape = (cfg.cout, cfg.cin, cfg.k, cfg.k)
    w = jax.random.normal(kw_, wshape, jnp.float32) * 0.1
    b = jax.random.normal(kb_, (cfg.cout,), jnp.float32) * 0.1
    x = jax.random.normal(kx, (2, spatial, spatial, cfg.cin), jnp.float32)
    xq = x.astype(jnp.bfloat16).astype(jnp.float32)
    wq = w.astype(jnp.bfloat16).astype(jnp.float32)
    got = _apply_layer(x.astype(jnp.bfloat16), _prepare_layer(cfg, w, b), cfg)
    got = got[..., :cfg.cout].astype(jnp.float32)
    if cfg.kind == "convT":
        want = _ref_conv_transpose(xq, wq, b)
    else:
        want = _ref_conv(xq, wq, b, cfg.stride, cfg.pad, cfg.dil)
    assert got.shape == want.shape, (cfg.name, got.shape, want.shape)
    err = float(jnp.max(jnp.abs(got - want)))
    assert err < 5e-2, (cfg.name, err)


# ----------------------------------------------------------------------------
if __name__ == "__main__":
    key = jax.random.PRNGKey(0)
    pkey, xkey, ckey = jax.random.split(key, 3)

    # Kernel correctness unit checks (stem / strided / dilated / transposed conv).
    for i, ccfg in enumerate(_CHECKS):
        _check_layer(ccfg, jax.random.fold_in(ckey, i))

    raw = make_params(pkey)
    prepared = prepare_params(raw)

    # Small luminance input, NCHW, values roughly in L-channel range [0, 100].
    N, H, W = 2, 32, 32
    input_l = jax.random.uniform(xkey, (N, 1, H, W), jnp.float32) * 100.0

    proba_64 = eccv_forward(prepared, input_l)
    proba_64 = jax.block_until_ready(proba_64)

    assert proba_64.shape == (N, 313, H // 4, W // 4), proba_64.shape
    assert bool(jnp.all(jnp.isfinite(proba_64)))
    # softmax probabilities must sum to ~1 over the 313 bins (exact divide epilogue)
    sums = jnp.sum(proba_64, axis=1)
    assert bool(jnp.allclose(sums, 1.0, atol=1e-3))

    print("KERNEL_OK")
</pallas_src>

<mosaic_0001>
module attributes {stable_mosaic.version = 11 : i64} {
  func.func @_conv_mm_kernel(%arg0: i32, %arg1: i32, %arg2: memref<72x16xbf16, #tpu.memory_space<vmem>>, %arg3: memref<1x16x128xbf16, #tpu.memory_space<vmem>>, %arg4: memref<2x128xf32, #tpu.memory_space<vmem>>, %arg5: memref<72x128xbf16, #tpu.memory_space<vmem>>, %arg6: memref<72x128xf32, #tpu.memory_space<vmem>>) attributes {dimension_semantics = [#tpu.dimension_semantics<parallel>, #tpu.dimension_semantics<parallel>], iteration_bounds = array<i64: 1, 1>, scalar_prefetch = 0 : i64, scratch_operands = 1 : i64, tpu.core_type = #tpu.core_type<tc>, window_params = [{pipeline_mode = #tpu.pipeline_mode<synchronous>, transform_indices = @transform_0, window_bounds = array<i64: 72, 16>}, {transform_indices = @transform_1, window_bounds = array<i64: 1, 16, 128>}, {transform_indices = @transform_2, window_bounds = array<i64: 2, 128>}, {transform_indices = @transform_3, window_bounds = array<i64: 72, 128>}]} {
    %c72_i32 = arith.constant 72 : i32
    %0 = arith.muli %arg1, %c72_i32 : i32
    %1 = tpu.assume_multiple %0, 8 : i32
    %c0_i32 = arith.constant 0 : i32
    %2 = arith.addi %1, %c0_i32 : i32
    %3 = arith.index_cast %2 : i32 to index
    %c0 = arith.constant 0 : index
    %4 = vector.load %arg2[%3, %c0] : memref<72x16xbf16, #tpu.memory_space<vmem>>, vector<72x16xbf16>
    %c0_0 = arith.constant 0 : index
    %c0_1 = arith.constant 0 : index
    %c0_2 = arith.constant 0 : index
    %5 = vector.load %arg3[%c0_0, %c0_1, %c0_2] : memref<1x16x128xbf16, #tpu.memory_space<vmem>>, vector<1x16x128xbf16>
    %6 = vector.shape_cast %5 : vector<1x16x128xbf16> to vector<16x128xbf16>
    %cst = arith.constant dense<0.000000e+00> : vector<72x128xf32>
    %7 = tpu.matmul %4, %6, %cst {dimension_numbers = #tpu.dot_dimension_numbers<[1], [0], [0], [1], [0, 0, 1, 1], [], []>} : vector<72x16xbf16>, vector<16x128xbf16>, vector<72x128xf32> -> vector<72x128xf32>
    %c0_3 = arith.constant 0 : index
    %c0_4 = arith.constant 0 : index
    %8 = vector.load %arg6[%c0_3, %c0_4] : memref<72x128xf32, #tpu.memory_space<vmem>>, vector<72x128xf32>
    tpu.vector_store %arg6[%c0_3, %c0_4], %7 {strides = array<i32>} : memref<72x128xf32, #tpu.memory_space<vmem>>, vector<72x128xf32>,
    %c0_5 = arith.constant 0 : index
    %c0_6 = arith.constant 0 : index
    %9 = vector.load %arg6[%c0_5, %c0_6] : memref<72x128xf32, #tpu.memory_space<vmem>>, vector<72x128xf32>
    %c0_7 = arith.constant 0 : index
    %c0_8 = arith.constant 0 : index
    %10 = vector.load %arg4[%c0_7, %c0_8] : memref<2x128xf32, #tpu.memory_space<vmem>>, vector<1x128xf32>
    %11 = vector.broadcast %10 : vector<1x128xf32> to vector<72x128xf32>
    %12 = arith.addf %9, %11 : vector<72x128xf32>
    %13 = arith.truncf %12 : vector<72x128xf32> to vector<72x128xbf16>
    %c0_9 = arith.constant 0 : index
    %c0_10 = arith.constant 0 : index
    %14 = vector.load %arg5[%c0_9, %c0_10] : memref<72x128xbf16, #tpu.memory_space<vmem>>, vector<72x128xbf16>
    tpu.vector_store %arg5[%c0_9, %c0_10], %13 {strides = array<i32>} : memref<72x128xbf16, #tpu.memory_space<vmem>>, vector<72x128xbf16>,
    return
  }
  func.func @transform_0(%arg0: i32, %arg1: i32) -> (i32, i32) {
    %c0_i32 = arith.constant 0 : i32
    %c0_i32_0 = arith.constant 0 : i32
    %c0_i32_1 = arith.constant 0 : i32
    return %c0_i32, %c0_i32_0 : i32, i32
  }
  func.func @transform_1(%arg0: i32, %arg1: i32) -> (i32, i32, i32) {
    %c0_i32 = arith.constant 0 : i32
    %c0_i32_0 = arith.constant 0 : i32
    %c0_i32_1 = arith.constant 0 : i32
    return %c0_i32, %c0_i32_0, %arg0 : i32, i32, i32
  }
  func.func @transform_2(%arg0: i32, %arg1: i32) -> (i32, i32) {
    %c0_i32 = arith.constant 0 : i32
    %c0_i32_0 = arith.constant 0 : i32
    return %c0_i32, %arg0 : i32, i32
  }
  func.func @transform_3(%arg0: i32, %arg1: i32) -> (i32, i32) {
    %c0_i32 = arith.constant 0 : i32
    return %arg1, %arg0 : i32, i32
  }
}

</mosaic_0001>

<bundles_post_ra>
// kernel: tpu_custom_call.1
= control target key start
LH: loop header
LB: loop body
LE: loop exit
PB: predicated region body
PF: predicated region fallthrough
CT: control target
= control target key end

     0   :  { %vm61_vm0 = vcmask 130048   ;;  %s310_s0 = inlined_call_operand.vmem [shape: bf16[72,16], index: 0, kind: input, shape index: {}]   ;;  %s311_s1 = inlined_call_operand.vmem [shape: bf16[1,16,128], index: 1, kind: input, shape index: {}]   ;;  %s312_s2 = inlined_call_operand.vmem [shape: f32[2,128], index: 2, kind: input, shape index: {}]   ;;  %s313_s3 = inlined_call_operand.hbm [shape: bf16[72,128], index: 3, kind: output, shape index: {}]  }
   0x1   :  { %v206_v0 = vld [vmem:[%s311_s1] sm:$0xff]  ;;  %v204_v1 = vld [vmem:[%s310_s0 + $0x10] sm:$0xff]  ;;  %v203_v4 = vld [vmem:[%s310_s0 + $0x8] sm:$0xff] }
   0x2   :  { %v202_v2 = vld [vmem:[%s310_s0] sm:$0xff]  ;;  %231 = vmatpush.bf16.msra.mxu2 %v206_v0  ;;  %84 = vmatpush.bf16.msra.mxu0 %v206_v0 }
   0x3   :  { %v29_v3 = vld [vmem:[%s310_s0 + $0x20] sm:$0xf] }
   0x4   :  { %v49_v5 = vunpack.c.l.b16 %v29_v3 }
   0x5   :  { %8 = vsyncpa [#allocation4], 0  ;;  %230 = vmatpush.bf16.msra.mxu1 %v206_v0  ;;  %232 = vmatpush.bf16.msra.mxu3 %v206_v0  ;;  %v205_v7 = vld [vmem:[%s310_s0 + $0x18] sm:$0xff]  ;;  %v236_v10 = vld [vmem:[%s312_s2] ss:$0 sm:$0xff]  ;;  %s263_s0 = smov [#allocation3]  }
   0x6   :  { %v54_v6 = vpack.c.b16 %v49_v5, %v49_v5  ;;  %199 = vmatmul.msk.bf16.vlgmr.msra.gmra.mxu2 %vm61_vm0, %v204_v1  ;;  %197 = vmatmul.msk.bf16.vlgmr.msra.gmra.mxu0 %vm61_vm0, %v202_v2  ;;  %s161_s2 = sshll.u32 %s263_s0, 4  ;;  %s163_s27 = sshll.u32 %s313_s3, 4  ;;  %s162_s2 = int_to_ptr.vmem [resolvable:$true] %s161_s2  ;;  %s164_s27 = int_to_ptr.hbm [resolvable:$true] %s163_s27 }
   0x7   :  { %s264_s28 = smov 64   ;;  %s265_s29 = smov 4  }
   0x8   :  { %198 = vmatmul.msk.bf16.vlgmr.msra.gmra.mxu1 %vm61_vm0, %v203_v4  ;;  %201 = vmatmul.msk.bf16.vlgmr.msra.gmra.mxu3 %vm61_vm0, %v54_v6 }
  0x16   :  { %200 = vmatmul.msk.bf16.gmra.mxu2 %vm61_vm0, %v205_v7 }
  0x83   :  { %v86_v8 = vpop.f32.mrf.mxu0 }
  0x84   :  { %v130_v12 = vadd.f32 %v236_v10, %v86_v8 }
  0x85   :  { %v91_v9 = vpop.f32.mrf.mxu1 }
  0x86   :  { %v132_v14 = vadd.f32 %v236_v10, %v91_v9 }
  0x89   :  { %v96_v11 = vpop.f32.mrf.mxu2 }
  0x8a   :  { %v134_v24 = vadd.f32 %v236_v10, %v96_v11 }
  0x8b   :  { %v106_v13 = vpop.f32.mrf.mxu3  ;;  %v88_v16 = vpop.f32.mrf.mxu0 }
  0x8c   :  { %v138_v15 = vadd.f32 %v236_v10, %v106_v13  ;;  %v131_v17 = vadd.f32 %v236_v10, %v88_v16 }
  0x8d   :  { %v93_v18 = vpop.f32.mrf.mxu1 }
  0x8e   :  { %v147_v19 = vpack.c.bf16 %v138_v15, %v138_v15  ;;  %v133_v20 = vadd.f32 %v236_v10, %v93_v18  ;;  %v210_v21 = vpack.c.bf16 %v131_v17, %v130_v12 }
  0x90   :  { %156 = vst [vmem:[#allocation3 + $0x20] sm:$0xf] %v147_v19  ;;  %v215_v22 = vpack.c.bf16 %v133_v20, %v132_v14 }
  0x91   :  { %211 = vst [vmem:[#allocation3] sm:$0xff] %v210_v21   ;;  %v98_v23 = vpop.f32.mrf.mxu2 }
  0x92   :  { %227 = vst [vmem:[#allocation3 + $0x8] sm:$0xff] %v215_v22   ;;  %v135_v25 = vadd.f32 %v236_v10, %v98_v23 }
  0x93   :  { %v108_v26 = vpop.f32.mrf.mxu3 }
  0x94   :  { %v220_v27 = vpack.c.bf16 %v135_v25, %v134_v24 }
  0x96   :  { %228 = vst [vmem:[#allocation3 + $0x10] sm:$0xff] %v220_v27  }
  0x99   :  { %v101_v28 = vpop.f32.mrf.mxu2 }
  0x9a   :  { %v136_v30 = vadd.f32 %v236_v10, %v101_v28 }
  0xa1   :  { %v103_v29 = vpop.f32.mrf.mxu2 }
  0xa2   :  { %v137_v31 = vadd.f32 %v236_v10, %v103_v29 }
  0xa4   :  { %v225_v32 = vpack.c.bf16 %v137_v31, %v136_v30 }
  0xa6   :  { %229 = vst [vmem:[#allocation3 + $0x18] sm:$0xff] %v225_v32  }
  0xa7   :  { %169 = dma.vmem_to_hbm [thread:$0]  %s162_s2, 576, %s164_s27, [#allocation4], %s264_s28, %s264_s28, %s265_s29  }
  0xa8   :  { %261 = dma.done.wait [#allocation4], 576  }
  0xa9   :  { %262 = vsyncadd [#allocation4], 4294966720 }
  0xaa   :  { %174 = vsyncpa [#allocation4], 1 }

</bundles_post_ra>
